<compile_context>
chip_gen: v5e
topology: v5e:2x2
jax: 0.10.0
libtpu: 0.0.40
codegen_flags: <defaults>
</compile_context>

<pallas_src>
import functools

import jax
import jax.numpy as jnp
from jax.experimental import pallas as pl
from jax.experimental.pallas import tpu as pltpu


_VMEM_BUDGET_BYTES = 24 * 1024 * 1024   # tile-sizing target: I/O double-buffers + f32 temps
_VMEM_LIMIT_BYTES = 48 * 1024 * 1024    # scoped-VMEM limit: < v7x 64 MiB physical, > all defaults
_MAX_BATCH_BLOCK = 8                    # cap on batch elements per grid step (unrolled in-kernel)


def _round_up(x, m):
    return (x + m - 1) // m * m


def _choose_tiles(N, HW, C_in, mid, C_out, in_itemsize, out_itemsize):
    """Pick (batch_block nb, pixel tile tm, grid dims) from static shapes."""
    # Per-pixel VMEM bytes per grid step: double-buffered input + 2 outputs,
    # plus f32 temporaries (x cast, h, up, exp(-up), sig) inside the kernel.
    per_px = (2 * (C_in * in_itemsize + 2 * C_out * out_itemsize)
              + 4 * (C_in + mid + 4 * C_out))
    max_px = max(128, _VMEM_BUDGET_BYTES // per_px)

    if HW > max_px:
        # Large image: one batch element per step, big lane-aligned pixel tile.
        nb = 1
        tm = max(128, (max_px // 128) * 128)
    else:
        # Small image: whole image per step (block_shape == full dim is legal even if
        # HW % 128 != 0); block batch elements to keep per-step DMA large.
        tm = HW
        nb = min(N, _MAX_BATCH_BLOCK, max(1, max_px // HW))
        while N % nb:   # keep nb a divisor of N -> all batch blocks full
            nb -= 1

    n_batch = N // nb
    n_pix = pl.cdiv(HW, tm)   # ragged last block is masked by Pallas; no pad/slice

    # Keep >= 2 grid steps so the megacore split (v7x: 2 TensorCores) has work for
    # both cores.
    if n_batch * n_pix < 2:
        if N >= 2:
            nb = max(1, N // 2)
            while N % nb:
                nb -= 1
            n_batch = N // nb
        elif HW >= 256:
            tm_half = _round_up(-(-HW // 2), 128)
            if tm_half < HW:
                tm = tm_half
                n_pix = pl.cdiv(HW, tm)
    return nb, tm, n_batch, n_pix


def scab_kernel(x_ref, w1_ref, b1_ref, w2_ref, b2_ref, up_ref, sig_ref):
    # x_ref:   (nb, C_in, tm)   pixel axis on lanes (lane-dense loads/stores)
    # w1_ref:  (mid, C_in)      b1_ref: (mid, 1)
    # w2_ref:  (C_out, mid)     b2_ref: (C_out, 1)
    # up_ref / sig_ref: (nb, C_out, tm)
    w1 = w1_ref[...]
    b1 = b1_ref[...]
    w2 = w2_ref[...]
    b2 = b2_ref[...]
    # nb is a small static int (<= _MAX_BATCH_BLOCK): unrolled loop keeps the channel
    # contractions in the simple (M,K)x(K,tm) 2-D form. K in {4,8} -> compute is
    # negligible and fully hidden behind the HBM pipeline.
    for b in range(x_ref.shape[0]):
        x = x_ref[b].astype(jnp.float32)                                   # (C_in, tm)
        h = jnp.dot(w1, x, preferred_element_type=jnp.float32) + b1        # (mid, tm)
        h = jnp.maximum(h, 0.0)                                            # ReLU
        up = jnp.dot(w2, h, preferred_element_type=jnp.float32) + b2       # (C_out, tm)
        up_ref[b] = up.astype(up_ref.dtype)
        # sigmoid = 1 / (1 + exp(-up)): exp goes to the EUP slot (free under the
        # DMA-bound pipeline). Precise reciprocal kept for bit-accuracy;
        # pl.reciprocal(..., approx=True) is available if ~2e-4 error is acceptable.
        sig_ref[b] = (1.0 / (1.0 + jnp.exp(-up))).astype(sig_ref.dtype)


@functools.partial(jax.jit, static_argnames=("out_dtype",))
def scab_forward(x_nchw, w1, b1, w2, b2, *, out_dtype=None):
    """SCAB forward.

    x_nchw: (N, C_in, H, W)
    w1: (mid, C_in),  b1: (mid,)    -- first 1x1 conv (PyTorch (out,in) layout)
    w2: (C_out, mid), b2: (C_out,)  -- second 1x1 conv
    out_dtype: optional output dtype (e.g. jnp.bfloat16 halves store traffic);
               defaults to x's dtype.
    Returns (up, sigmoid(up)), each (N, C_out, H, W).
    """
    N, C_in, H, W = x_nchw.shape
    mid = w1.shape[0]
    C_out = w2.shape[0]
    HW = H * W
    out_dtype = x_nchw.dtype if out_dtype is None else jnp.dtype(out_dtype)

    # Channels-first flat view: free reshape, no transpose, no extra HBM pass.
    x_flat = x_nchw.reshape(N, C_in, HW)

    nb, tm, n_batch, n_pix = _choose_tiles(
        N, HW, C_in, mid, C_out,
        jnp.dtype(x_nchw.dtype).itemsize, jnp.dtype(out_dtype).itemsize)

    w1_f = w1.astype(jnp.float32)
    w2_f = w2.astype(jnp.float32)
    b1_2d = b1.reshape(mid, 1).astype(jnp.float32)
    b2_2d = b2.reshape(C_out, 1).astype(jnp.float32)

    up_flat, sig_flat = pl.pallas_call(
        scab_kernel,
        out_shape=(
            jax.ShapeDtypeStruct((N, C_out, HW), out_dtype),
            jax.ShapeDtypeStruct((N, C_out, HW), out_dtype),
        ),
        grid=(n_batch, n_pix),
        in_specs=[
            pl.BlockSpec((nb, C_in, tm), lambda b, j: (b, 0, j)),
            # Grid-invariant weights/biases (constant index_map): the pipeline skips
            # re-DMA when the block index doesn't change; buffers are tiny.
            pl.BlockSpec((mid, C_in), lambda b, j: (0, 0)),
            pl.BlockSpec((mid, 1), lambda b, j: (0, 0)),
            pl.BlockSpec((C_out, mid), lambda b, j: (0, 0)),
            pl.BlockSpec((C_out, 1), lambda b, j: (0, 0)),
        ],
        out_specs=(
            pl.BlockSpec((nb, C_out, tm), lambda b, j: (b, 0, j)),
            pl.BlockSpec((nb, C_out, tm), lambda b, j: (b, 0, j)),
        ),
        compiler_params=pltpu.CompilerParams(
            dimension_semantics=("parallel", "parallel"),
            vmem_limit_bytes=_VMEM_LIMIT_BYTES),
    )(x_flat, w1_f, b1_2d, w2_f, b2_2d)

    up = up_flat.reshape(N, C_out, H, W)
    sig = sig_flat.reshape(N, C_out, H, W)
    return up, sig


def _ref_scab(x_nchw, w1, b1, w2, b2):
    # Pure-JAX reference of the PyTorch forward (1x1 convs as channel matmuls).
    N, C, H, W = x_nchw.shape
    xf = x_nchw.reshape(N, C, H * W)
    h = jnp.maximum(jnp.einsum('mc,ncp->nmp', w1, xf) + b1[None, :, None], 0.0)
    up = jnp.einsum('om,nmp->nop', w2, h) + b2[None, :, None]
    up = up.reshape(N, w2.shape[0], H, W)
    return up, jax.nn.sigmoid(up)


if __name__ == "__main__":
    key = jax.random.PRNGKey(0)
    N, in_ch, H, W = 2, 4, 16, 16
    out_ch = 8
    mid = out_ch // 2

    kx, k1, kb1, k2, kb2 = jax.random.split(key, 5)
    x = jax.random.normal(kx, (N, in_ch, H, W), dtype=jnp.float32)

    # Deterministic parameter init (uniform, Conv2d-like fan_in bounds),
    # weights in PyTorch (out_ch, in_ch) layout.
    bound1 = 1.0 / (in_ch ** 0.5)
    w1 = jax.random.uniform(k1, (mid, in_ch), minval=-bound1, maxval=bound1,
                            dtype=jnp.float32)
    b1 = jax.random.uniform(kb1, (mid,), minval=-bound1, maxval=bound1,
                            dtype=jnp.float32)
    bound2 = 1.0 / (mid ** 0.5)
    w2 = jax.random.uniform(k2, (out_ch, mid), minval=-bound2, maxval=bound2,
                            dtype=jnp.float32)
    b2 = jax.random.uniform(kb2, (out_ch,), minval=-bound2, maxval=bound2,
                            dtype=jnp.float32)

    up, sig = jax.block_until_ready(scab_forward(x, w1, b1, w2, b2))

    up_ref, sig_ref = _ref_scab(x, w1, b1, w2, b2)
    assert up.shape == (N, out_ch, H, W) and sig.shape == (N, out_ch, H, W)
    assert jnp.allclose(up, up_ref, atol=1e-5, rtol=1e-5)
    assert jnp.allclose(sig, sig_ref, atol=1e-5, rtol=1e-5)

    print("KERNEL_OK")
</pallas_src>

<mosaic_0001>
module attributes {stable_mosaic.version = 11 : i64} {
  func.func @scab_kernel(%arg0: i32, %arg1: i32, %arg2: memref<1x4x256xf32, #tpu.memory_space<vmem>>, %arg3: memref<4x4xf32, #tpu.memory_space<vmem>>, %arg4: memref<4x1xf32, #tpu.memory_space<vmem>>, %arg5: memref<8x4xf32, #tpu.memory_space<vmem>>, %arg6: memref<8x1xf32, #tpu.memory_space<vmem>>, %arg7: memref<1x8x256xf32, #tpu.memory_space<vmem>>, %arg8: memref<1x8x256xf32, #tpu.memory_space<vmem>>) attributes {dimension_semantics = [#tpu.dimension_semantics<parallel>, #tpu.dimension_semantics<parallel>], iteration_bounds = array<i64: 2, 1>, scalar_prefetch = 0 : i64, scratch_operands = 0 : i64, tpu.core_type = #tpu.core_type<tc>, window_params = [{transform_indices = @transform_0, window_bounds = array<i64: 1, 4, 256>}, {pipeline_mode = #tpu.pipeline_mode<synchronous>, transform_indices = @transform_1, window_bounds = array<i64: 4, 4>}, {pipeline_mode = #tpu.pipeline_mode<synchronous>, transform_indices = @transform_2, window_bounds = array<i64: 4, 1>}, {pipeline_mode = #tpu.pipeline_mode<synchronous>, transform_indices = @transform_3, window_bounds = array<i64: 8, 4>}, {pipeline_mode = #tpu.pipeline_mode<synchronous>, transform_indices = @transform_4, window_bounds = array<i64: 8, 1>}, {transform_indices = @transform_5, window_bounds = array<i64: 1, 8, 256>}, {transform_indices = @transform_6, window_bounds = array<i64: 1, 8, 256>}]} {
    %c0 = arith.constant 0 : index
    %c0_0 = arith.constant 0 : index
    %0 = vector.load %arg3[%c0, %c0_0] : memref<4x4xf32, #tpu.memory_space<vmem>>, vector<4x4xf32>
    %c0_1 = arith.constant 0 : index
    %c0_2 = arith.constant 0 : index
    %1 = vector.load %arg4[%c0_1, %c0_2] : memref<4x1xf32, #tpu.memory_space<vmem>>, vector<4x1xf32>
    %c0_3 = arith.constant 0 : index
    %c0_4 = arith.constant 0 : index
    %2 = vector.load %arg5[%c0_3, %c0_4] : memref<8x4xf32, #tpu.memory_space<vmem>>, vector<8x4xf32>
    %c0_5 = arith.constant 0 : index
    %c0_6 = arith.constant 0 : index
    %3 = vector.load %arg6[%c0_5, %c0_6] : memref<8x1xf32, #tpu.memory_space<vmem>>, vector<8x1xf32>
    %c0_7 = arith.constant 0 : index
    %c0_8 = arith.constant 0 : index
    %c0_9 = arith.constant 0 : index
    %4 = vector.load %arg2[%c0_7, %c0_8, %c0_9] : memref<1x4x256xf32, #tpu.memory_space<vmem>>, vector<1x4x256xf32>
    %5 = vector.shape_cast %4 : vector<1x4x256xf32> to vector<4x256xf32>
    %cst = arith.constant dense<0.000000e+00> : vector<4x256xf32>
    %6 = tpu.matmul %0, %5, %cst {dimension_numbers = #tpu.dot_dimension_numbers<[1], [0], [0], [1], [0, 0, 1, 1], [], []>} : vector<4x4xf32>, vector<4x256xf32>, vector<4x256xf32> -> vector<4x256xf32>
    %7 = vector.broadcast %1 : vector<4x1xf32> to vector<4x256xf32>
    %8 = arith.addf %6, %7 : vector<4x256xf32>
    %cst_10 = arith.constant 0.000000e+00 : f32
    %9 = vector.broadcast %cst_10 : f32 to vector<4x256xf32>
    %10 = arith.maximumf %8, %9 : vector<4x256xf32>
    %cst_11 = arith.constant dense<0.000000e+00> : vector<8x256xf32>
    %11 = tpu.matmul %2, %10, %cst_11 {dimension_numbers = #tpu.dot_dimension_numbers<[1], [0], [0], [1], [0, 0, 1, 1], [], []>} : vector<8x4xf32>, vector<4x256xf32>, vector<8x256xf32> -> vector<8x256xf32>
    %12 = vector.broadcast %3 : vector<8x1xf32> to vector<8x256xf32>
    %13 = arith.addf %11, %12 : vector<8x256xf32>
    %c0_12 = arith.constant 0 : index
    %c0_13 = arith.constant 0 : index
    %c0_14 = arith.constant 0 : index
    %14 = vector.load %arg7[%c0_12, %c0_13, %c0_14] : memref<1x8x256xf32, #tpu.memory_space<vmem>>, vector<1x8x256xf32>
    %15 = vector.shape_cast %14 : vector<1x8x256xf32> to vector<8x256xf32>
    %16 = vector.shape_cast %13 : vector<8x256xf32> to vector<1x8x256xf32>
    tpu.vector_store %arg7[%c0_12, %c0_13, %c0_14], %16 {strides = array<i32>} : memref<1x8x256xf32, #tpu.memory_space<vmem>>, vector<1x8x256xf32>,
    %cst_15 = arith.constant 0.000000e+00 : f32
    %17 = vector.broadcast %cst_15 : f32 to vector<8x256xf32>
    %18 = arith.subf %17, %13 : vector<8x256xf32>
    %19 = math.exp %18 : vector<8x256xf32>
    %cst_16 = arith.constant 1.000000e+00 : f32
    %20 = vector.broadcast %cst_16 : f32 to vector<8x256xf32>
    %21 = arith.addf %20, %19 : vector<8x256xf32>
    %cst_17 = arith.constant 1.000000e+00 : f32
    %22 = vector.broadcast %cst_17 : f32 to vector<8x256xf32>
    %23 = arith.divf %22, %21 : vector<8x256xf32>
    %c0_18 = arith.constant 0 : index
    %c0_19 = arith.constant 0 : index
    %c0_20 = arith.constant 0 : index
    %24 = vector.load %arg8[%c0_18, %c0_19, %c0_20] : memref<1x8x256xf32, #tpu.memory_space<vmem>>, vector<1x8x256xf32>
    %25 = vector.shape_cast %24 : vector<1x8x256xf32> to vector<8x256xf32>
    %26 = vector.shape_cast %23 : vector<8x256xf32> to vector<1x8x256xf32>
    tpu.vector_store %arg8[%c0_18, %c0_19, %c0_20], %26 {strides = array<i32>} : memref<1x8x256xf32, #tpu.memory_space<vmem>>, vector<1x8x256xf32>,
    return
  }
  func.func @transform_0(%arg0: i32, %arg1: i32) -> (i32, i32, i32) {
    %c0_i32 = arith.constant 0 : i32
    %c0_i32_0 = arith.constant 0 : i32
    return %arg0, %c0_i32, %arg1 : i32, i32, i32
  }
  func.func @transform_1(%arg0: i32, %arg1: i32) -> (i32, i32) {
    %c0_i32 = arith.constant 0 : i32
    %c0_i32_0 = arith.constant 0 : i32
    %c0_i32_1 = arith.constant 0 : i32
    return %c0_i32, %c0_i32_0 : i32, i32
  }
  func.func @transform_2(%arg0: i32, %arg1: i32) -> (i32, i32) {
    %c0_i32 = arith.constant 0 : i32
    %c0_i32_0 = arith.constant 0 : i32
    %c0_i32_1 = arith.constant 0 : i32
    return %c0_i32, %c0_i32_0 : i32, i32
  }
  func.func @transform_3(%arg0: i32, %arg1: i32) -> (i32, i32) {
    %c0_i32 = arith.constant 0 : i32
    %c0_i32_0 = arith.constant 0 : i32
    %c0_i32_1 = arith.constant 0 : i32
    return %c0_i32, %c0_i32_0 : i32, i32
  }
  func.func @transform_4(%arg0: i32, %arg1: i32) -> (i32, i32) {
    %c0_i32 = arith.constant 0 : i32
    %c0_i32_0 = arith.constant 0 : i32
    %c0_i32_1 = arith.constant 0 : i32
    return %c0_i32, %c0_i32_0 : i32, i32
  }
  func.func @transform_5(%arg0: i32, %arg1: i32) -> (i32, i32, i32) {
    %c0_i32 = arith.constant 0 : i32
    %c0_i32_0 = arith.constant 0 : i32
    return %arg0, %c0_i32, %arg1 : i32, i32, i32
  }
  func.func @transform_6(%arg0: i32, %arg1: i32) -> (i32, i32, i32) {
    %c0_i32 = arith.constant 0 : i32
    %c0_i32_0 = arith.constant 0 : i32
    return %arg0, %c0_i32, %arg1 : i32, i32, i32
  }
}

</mosaic_0001>

<bundles_post_ra>
// kernel: scab_forward.1
= control target key start
LH: loop header
LB: loop body
LE: loop exit
PB: predicated region body
PF: predicated region fallthrough
CT: control target
= control target key end

     0   :  { %s731_s21 = smov 0   ;;  %s733_s22 = smov 0   ;;  %s795_s0 = inlined_call_operand.vmem [shape: f32[2,4,256], index: 0, kind: input, shape index: {}]   ;;  %s796_s1 = inlined_call_operand.vmem [shape: f32[4,4], index: 1, kind: input, shape index: {}]   ;;  %s797_s2 = inlined_call_operand.vmem [shape: f32[4,1], index: 2, kind: input, shape index: {}]   ;;  %s798_s3 = inlined_call_operand.vmem [shape: f32[8,4], index: 3, kind: input, shape index: {}]   ;;  %s799_s4 = inlined_call_operand.vmem [shape: f32[8,1], index: 4, kind: input, shape index: {}]   ;;  %s800_s5 = inlined_call_operand.vmem [shape: f32[2,8,256], index: 5, kind: output, shape index: {0}]   ;;  %s801_s6 = inlined_call_operand.vmem [shape: f32[2,8,256], index: 6, kind: output, shape index: {1}]  }
   0x1   :  { %s735_s23 = smov 0  }
   0x2 LB: > { %s29_s24 = sadd.s32 1, %s689_s22  ;;  %p617_p0 = scmp.ge.s32.totalorder %s693_s23, 1  ;;  %s693_s23 = sphi %s735_s23, %s17_s23   ;;  %s689_s22 = sphi %s733_s22, %s803_s22   ;;  %s685_s21 = sphi %s731_s21, %s802_s21  }
   0x3   : > { %p31_p1 = scmp.ge.s32.totalorder %s29_s24, 2  ;;  %p238_p2 = scmp.lt.s32.totalorder %s693_s23, 3 }
   0x5   : > { %s805_s24 = smov (%p31_p1, %s29_s24), 0  ;;  %p239_p3 = pnand %p617_p0, %p238_p2 }
   0x6   : > { %p286_p4 = scmp.lt.s32.totalorder (!%p239_p3), %s685_s21, 1 }
   0x7   : > { %242 = sbr.rel (%p239_p3) target bundleno = 322 (0x142), region = 40 }
   0xc   : > { %v695_v0 = vmov 0   ;;  %v316_v1 = vld [vmem:[%s797_s2] sm:$0xf]  ;;  %s807_s21 = smov (!%p286_p4, %s685_s21), 1  ;;  %vm333_vm0 = vcmask 1043456   ;;  %vm329_vm1 = vcmask 31744  }
   0xd   : > { %662 = vset.pattern.permute.xlu0 %v695_v0  ;;  %s634_s27 = sshll.u32 %s807_s21, 3  ;;  %v318_v3 = vld [vmem:[%s799_s4] sm:$0xff]  ;;  %s635_s13 = sshll.u32 %s807_s21, 4 }
   0xe   : > { %322 = vperm.xlu0 %662, %v316_v1   ;;  %s293_s30 = scalar_lea.vmem %s795_s0, %s634_s27  ;;  %v315_v4 = vld [vmem:[%s796_s1] sm:$0xf]  ;;  %s303_s16 = scalar_lea.vmem %s800_s5, %s635_s13 }
   0xf   : > { %v319_v2 = vld [vmem:[%s293_s30] sm:$0xff]  ;;  %s313_s19 = scalar_lea.vmem %s801_s6, %s635_s13 }
  0x10   : > { %326 = vst [vmem:[#allocation1] ss:$2 sm:$0xff] %v319_v2  ;;  %v317_v14 = vld [vmem:[%s798_s3] sm:$0xff] }
  0x16   : > { %382 = vperm.xlu0 %662, %v318_v3  }
  0x17   : > { %v327_v5 = vld.sshfl [vmem:[#allocation1] sm:$0xff pattern:$0x75316420]  ;;  %v328_v6 = vld.sshfl [vmem:[#allocation1 + $0x8] sm:$0xff pattern:$0x75316420] }
  0x18   : > { %624 = vmatpush.msk.msra.mxu0 %vm333_vm0, %v327_v5  ;;  %626 = vmatpush.msk.msra.mxu1 %vm333_vm0, %v328_v6 }
  0x19   : > { %625 = vmatmul.msk.f32.vlgmr.msra.gmra.mxu0 %vm329_vm1, %v315_v4  ;;  %627 = vmatmul.msk.f32.vlgmr.msra.gmra.mxu1 %vm329_vm1, %v315_v4 }
  0x80   : > { %v323_v7 = vpop.permute.xlu0 %322 }
  0x88   : > { %v383_v15 = vpop.permute.xlu0 %382 }
  0x96   : > { %v355_v8 = vpop.f32.mrf.mxu0  ;;  %v375_v9 = vpop.f32.mrf.mxu1 }
  0x97   : > { %v356_v10 = vadd.f32 %v355_v8, %v323_v7  ;;  %v376_v11 = vadd.f32 %v375_v9, %v323_v7 }
  0x99   : > { %v378_v12 = vmax.f32 %v356_v10, 0.0  ;;  %v379_v13 = vmax.f32 %v376_v11, 0.0 }
  0x9b   : > { %628 = vmatpush.msk.msra.mxu2 %vm333_vm0, %v378_v12  ;;  %630 = vmatpush.msk.msra.mxu3 %vm333_vm0, %v379_v13 }
  0x9c   : > { %629 = vmatmul.msk.f32.vlgmr.msra.gmra.mxu2 %vm329_vm1, %v317_v14  ;;  %631 = vmatmul.msk.f32.vlgmr.msra.gmra.mxu3 %vm329_vm1, %v317_v14 }
 0x11f   : > { %v411_v16 = vpop.f32.mrf.mxu2  ;;  %v431_v17 = vpop.f32.mrf.mxu3 }
 0x120   : > { %v412_v18 = vadd.f32 %v411_v16, %v383_v15  ;;  %v432_v19 = vadd.f32 %v431_v17, %v383_v15 }
 0x122   : > { %434 = vst [vmem:[%s303_s16] sm:$0xff] %v412_v18  ;;  %v436_v20 = vsub.f32 0.0, %v412_v18  ;;  %v437_v21 = vsub.f32 0.0, %v432_v19 }
 0x123   : > { %435 = vst [vmem:[%s303_s16 + $0x8] sm:$0xff] %v432_v19 }
 0x124   : > { %v438_v22 = vmul.f32 1.442695, %v436_v20  ;;  %v440_v23 = vmul.f32 1.442695, %v437_v21 }
 0x126   : > { %663 = vpow2.f32 %v438_v22 }
 0x127   : > { %665 = vpow2.f32 %v440_v23 }
 0x12c   : > { %v664_v24 = vpop.eup %663 }
 0x12d   : > { %v666_v25 = vpop.eup %665  ;;  %v442_v26 = vadd.f32 1.0, %v664_v24 }
 0x12e   : > { %v443_v27 = vadd.f32 1.0, %v666_v25 }
 0x12f   : > { %667 = vrcp.f32 %v442_v26  ;;  %v455_v33 = vand.u32 2147483648, %v442_v26  ;;  %v453_v36 = vand.u32 2147483647, %v442_v26  ;;  %vm449_vm4 = vweird.f32 %v442_v26 }
 0x130   : > { %669 = vrcp.f32 %v443_v27  ;;  %v470_v37 = vand.u32 2147483648, %v443_v27  ;;  %v468_v39 = vand.u32 2147483647, %v443_v27  ;;  %vm464_vm6 = vweird.f32 %v443_v27 }
 0x131   : > { %v456_v41 = vor.u32 1.1754944e-38, %v455_v33  ;;  %vm454_vm7 = vcmp.eq.f32.partialorder %v453_v36, 8.507059e+37 }
 0x132   : > { %v471_v44 = vor.u32 1.1754944e-38, %v470_v37  ;;  %vm469_vm9 = vcmp.eq.f32.partialorder %v468_v39, 8.507059e+37 }
 0x135   : > { %v668_v28 = vpop.eup %667 }
 0x136   : > { %v670_v29 = vpop.eup %669  ;;  %v445_v30 = vmul.f32 %v668_v28, %v442_v26  ;;  %vm450_vm2 = vweird.f32 %v668_v28 }
 0x137   : > { %v460_v31 = vmul.f32 %v670_v29, %v443_v27  ;;  %vm465_vm3 = vweird.f32 %v670_v29  ;;  %vm451_vm5 = vmor %vm449_vm4, %vm450_vm2 }
 0x138   : > { %v446_v32 = vsub.f32 1.0, %v445_v30  ;;  %vm466_vm8 = vmor %vm464_vm6, %vm465_vm3 }
 0x139   : > { %v461_v34 = vsub.f32 1.0, %v460_v31 }
 0x13a   : > { %v447_v35 = vmul.f32 %v668_v28, %v446_v32 }
 0x13b   : > { %v462_v38 = vmul.f32 %v670_v29, %v461_v34 }
 0x13c   : > { %v448_v40 = vadd.f32 %v668_v28, %v447_v35 }
 0x13d   : > { %v463_v42 = vadd.f32 %v670_v29, %v462_v38 }
 0x13e   : > { %v452_v43 = vsel %vm451_vm5, %v668_v28, %v448_v40 }
 0x13f   : > { %v457_v45 = vsel %vm454_vm7, %v456_v41, %v452_v43  ;;  %v467_v46 = vsel %vm466_vm8, %v670_v29, %v463_v42 }
 0x140   : > { %474 = vst [vmem:[%s313_s19] sm:$0xff] %v457_v45  ;;  %v472_v47 = vsel %vm469_vm9, %v471_v44, %v467_v46 }
 0x141   : > { %475 = vst [vmem:[%s313_s19 + $0x8] sm:$0xff] %v472_v47 }
 0x142 PF: > { %s17_s23 = sadd.s32 1, %s693_s23   ;;  %s802_s21 = smov %s689_s22 }
 0x143   : > { %p14_p5 = scmp.ge.s32.totalorder %s17_s23, 4   ;;  %s803_s22 = smov %s805_s24 }
 0x145   :  { %16 = sbr.rel (!%p14_p5) target bundleno = 2 (0x2), region = 82 }

</bundles_post_ra>
